<compile_context>
chip_gen: v7x
topology: tpu7x:2x2x1
jax: 0.10.0
libtpu: 0.0.40
codegen_flags: <defaults>
</compile_context>

<pallas_src>
import functools
import re

import jax
import jax.numpy as jnp
from jax.experimental import pallas as pl
from jax.experimental.pallas import tpu as pltpu

_SENTINEL = -100.0
_LANES = 128
_SUBLANES = 8


def _tpu_generation() -> int:
    """Best-effort TPU generation from the device kind string ('TPU v6e' -> 6)."""
    try:
        kind = jax.devices()[0].device_kind
    except Exception:
        return 0
    digits = re.findall(r"\d+", kind)
    return int(digits[0]) if digits else 0


def _select_tiling():
    """Returns (block_rows_cap, max_splits) for the current chip."""
    gen = _tpu_generation()
    if gen >= 7:
        # v7x: 2 TensorCores -> 2-way parallel split; 8192-row blocks are
        # 2 inputs x 2 buffers x 4 MiB = 16 MiB, under the 32 MiB scoped default.
        return 8192, 2
    if gen == 6:
        # v6e: single TensorCore, 32 MiB scoped VMEM default.
        return 8192, 1
    # v5e / older / unknown: stay inside the 16 MiB scoped VMEM default.
    return 4096, 1


def _masked_mae_kernel(x_ref, t_ref, out_ref, *, block_rows, rows,
                       blocks_per_split, total_blocks,
                       needs_row_mask, has_redundant_blocks):
    s = pl.program_id(0)   # split index ("parallel" axis, megacore on v7x)
    i = pl.program_id(1)   # row-block within the split ("arbitrary" reduction)

    @pl.when(i == 0)
    def _init():
        out_ref[...] = jnp.zeros_like(out_ref)

    def accumulate(masked):
        x = x_ref[...].astype(jnp.float32)
        t = t_ref[...].astype(jnp.float32)
        valid = t != _SENTINEL
        if masked:
            # Only the single partial tail block pays for the iota row mask.
            logical_block = s * blocks_per_split + i
            row_ids = logical_block * block_rows + jax.lax.broadcasted_iota(
                jnp.int32, (block_rows, _LANES), 0)
            valid = jnp.logical_and(valid, row_ids < rows)
        err = jnp.where(valid, jnp.abs(x - t), jnp.float32(0.0))
        cnt = valid.astype(jnp.float32)
        # Pure-VPU accumulation into the resident (8, 128) output slabs;
        # the reshape groups whole (8, 128) tiles, so it is layout-free.
        err8 = jnp.sum(err.reshape(block_rows // _SUBLANES, _SUBLANES, _LANES), axis=0)
        cnt8 = jnp.sum(cnt.reshape(block_rows // _SUBLANES, _SUBLANES, _LANES), axis=0)
        out_ref[0, 0] += err8
        out_ref[0, 1] += cnt8

    if not needs_row_mask and not has_redundant_blocks:
        # Static fast path: every block is full and real -> no branches, no iota.
        accumulate(masked=False)
    else:
        logical_block = s * blocks_per_split + i
        n_full = total_blocks - 1 if needs_row_mask else total_blocks
        if n_full > 0:
            pl.when(logical_block < n_full)(lambda: accumulate(masked=False))
        if needs_row_mask:
            pl.when(jnp.logical_and(logical_block >= n_full,
                                    logical_block < total_blocks))(
                lambda: accumulate(masked=True))
        # logical_block >= total_blocks (redundant clamped block): compute skipped.


def masked_mae_loss(inputs: jax.Array, targets: jax.Array) -> jax.Array:
    """Masked MAE loss. inputs/targets: (batch, window, 1). Returns scalar f32."""
    x = jnp.reshape(inputs, (-1,))
    t = jnp.reshape(targets, (-1,))
    if x.dtype != jnp.float32:
        x = x.astype(jnp.float32)
    if t.dtype != jnp.float32:
        t = t.astype(jnp.float32)

    n = x.shape[0]
    n_aligned = (n // _LANES) * _LANES
    rows = n_aligned // _LANES

    total_err = jnp.float32(0.0)
    total_cnt = jnp.float32(0.0)

    if rows >= _SUBLANES:
        # Lane-dense (rows, 128) view of the aligned prefix.  Zero-copy reshape
        # when n is already a multiple of 128 (no slice, no pad).  For ragged n
        # the prefix slice is one contiguous copy at most; the < 128-element
        # remainder is handled below with plain jnp (no padded-array rewrite).
        x_main = x if n_aligned == n else x[:n_aligned]
        t_main = t if n_aligned == n else t[:n_aligned]
        x2d = x_main.reshape(rows, _LANES)
        t2d = t_main.reshape(rows, _LANES)

        block_rows_cap, max_splits = _select_tiling()
        block_rows = min(block_rows_cap, (rows // _SUBLANES) * _SUBLANES)
        total_blocks = pl.cdiv(rows, block_rows)
        num_splits = min(max_splits, total_blocks)
        blocks_per_split = pl.cdiv(total_blocks, num_splits)
        needs_row_mask = (rows % block_rows) != 0
        has_redundant_blocks = (num_splits * blocks_per_split) != total_blocks

        if has_redundant_blocks:
            def in_index_map(s_, i_):
                # Clamp redundant trailing blocks of the last split onto the
                # final real block; their compute is skipped in the kernel.
                return (jnp.minimum(s_ * blocks_per_split + i_, total_blocks - 1), 0)
        else:
            def in_index_map(s_, i_):
                return (s_ * blocks_per_split + i_, 0)

        kernel = functools.partial(
            _masked_mae_kernel, block_rows=block_rows, rows=rows,
            blocks_per_split=blocks_per_split, total_blocks=total_blocks,
            needs_row_mask=needs_row_mask,
            has_redundant_blocks=has_redundant_blocks)

        cost = pl.CostEstimate(
            flops=5 * n_aligned,
            transcendentals=0,
            bytes_accessed=2 * n_aligned * 4
            + num_splits * 2 * _SUBLANES * _LANES * 4,
        )

        partials = pl.pallas_call(
            kernel,
            out_shape=jax.ShapeDtypeStruct(
                (num_splits, 2, _SUBLANES, _LANES), jnp.float32),
            grid=(num_splits, blocks_per_split),
            in_specs=[
                pl.BlockSpec((block_rows, _LANES), in_index_map),
                pl.BlockSpec((block_rows, _LANES), in_index_map),
            ],
            out_specs=pl.BlockSpec((1, 2, _SUBLANES, _LANES),
                                   lambda s_, i_: (s_, 0, 0, 0)),
            compiler_params=pltpu.CompilerParams(
                dimension_semantics=("parallel", "arbitrary")),
            cost_estimate=cost,
        )(x2d, t2d)

        total_err = total_err + jnp.sum(partials[:, 0])
        total_cnt = total_cnt + jnp.sum(partials[:, 1])
    else:
        # Fewer than 8*128 elements: the whole input is the "tail" below.
        n_aligned = 0

    if n_aligned < n:
        # Ragged remainder (< 128 elements for the kernel path): trivial jnp op.
        x_tail = x[n_aligned:]
        t_tail = t[n_aligned:]
        m = t_tail != _SENTINEL
        total_err = total_err + jnp.sum(jnp.where(m, jnp.abs(x_tail - t_tail),
                                                  jnp.float32(0.0)))
        total_cnt = total_cnt + jnp.sum(m.astype(jnp.float32))

    # 0/0 -> NaN when every target is the sentinel, matching the torch reference.
    return total_err / total_cnt


def _reference(inputs, targets):
    x = jnp.reshape(inputs, (-1,)).astype(jnp.float32)
    t = jnp.reshape(targets, (-1,)).astype(jnp.float32)
    mask = (t != _SENTINEL).astype(jnp.float32)
    return jnp.sum(jnp.abs(x - t) * mask) / jnp.sum(mask)


def _make_case(key, batch, window, p_pad):
    k1, k2, k3 = jax.random.split(key, 3)
    inputs = jax.random.normal(k1, (batch, window, 1), dtype=jnp.float32)
    targets = jax.random.normal(k2, (batch, window, 1), dtype=jnp.float32)
    pad_mask = jax.random.bernoulli(k3, p=p_pad, shape=(batch, window, 1))
    targets = jnp.where(pad_mask, jnp.float32(_SENTINEL), targets)
    return inputs, targets


if __name__ == "__main__":
    key = jax.random.PRNGKey(0)
    k_small, k_ragged, k_big = jax.random.split(key, 3)

    # Primary small demo shape consistent with the module: (batch, window, 1).
    # n = 1040 -> one full (8, 128) block in the kernel + a 16-element jnp tail.
    inputs, targets = _make_case(k_small, batch=2, window=520, p_pad=0.3)
    loss = jax.block_until_ready(masked_mae_loss(inputs, targets))
    ref = _reference(inputs, targets)
    assert jnp.allclose(loss, ref, rtol=1e-4, atol=1e-6), (loss, ref)

    # Ragged size: partial last row-block (masked branch) + jnp tail (+ both
    # splits on v7x).
    inputs, targets = _make_case(k_ragged, batch=3, window=533, p_pad=0.2)
    loss = jax.block_until_ready(masked_mae_loss(inputs, targets))
    ref = _reference(inputs, targets)
    assert jnp.allclose(loss, ref, rtol=1e-4, atol=1e-5), (loss, ref)

    # Lane-aligned larger size: zero-copy path, multiple full blocks, the
    # branch-free fast path, and (on v7x) the two-way megacore split.
    inputs, targets = _make_case(k_big, batch=128, window=16384, p_pad=0.25)
    loss = jax.block_until_ready(masked_mae_loss(inputs, targets))
    ref = _reference(inputs, targets)
    assert jnp.allclose(loss, ref, rtol=1e-4, atol=1e-5), (loss, ref)

    print("KERNEL_OK")
</pallas_src>

<mosaic_0001>
module attributes {stable_mosaic.version = 11 : i64} {
  func.func @_masked_mae_kernel(%arg0: i32, %arg1: i32, %arg2: memref<8x128xf32, #tpu.memory_space<vmem>>, %arg3: memref<8x128xf32, #tpu.memory_space<vmem>>, %arg4: memref<1x2x8x128xf32, #tpu.memory_space<vmem>>) attributes {dimension_semantics = [#tpu.dimension_semantics<parallel>, #tpu.dimension_semantics<arbitrary>], iteration_bounds = array<i64: 1, 1>, scalar_prefetch = 0 : i64, scratch_operands = 0 : i64, tpu.core_type = #tpu.core_type<tc>, window_params = [{transform_indices = @transform_0, window_bounds = array<i64: 8, 128>}, {transform_indices = @transform_1, window_bounds = array<i64: 8, 128>}, {transform_indices = @transform_2, window_bounds = array<i64: 1, 2, 8, 128>}]} {
    %c0_i32 = arith.constant 0 : i32
    %0 = arith.cmpi eq, %arg1, %c0_i32 : i32
    %1 = arith.extui %0 : i1 to i32
    %c0_i32_0 = arith.constant 0 : i32
    %2 = arith.cmpi ne, %1, %c0_i32_0 : i32
    scf.if %2 {
      %cst_22 = arith.constant 0.000000e+00 : f32
      %29 = vector.broadcast %cst_22 : f32 to vector<1x2x8x128xf32>
      %c0_23 = arith.constant 0 : index
      %c0_24 = arith.constant 0 : index
      %c0_25 = arith.constant 0 : index
      %c0_26 = arith.constant 0 : index
      %30 = vector.load %arg4[%c0_23, %c0_24, %c0_25, %c0_26] : memref<1x2x8x128xf32, #tpu.memory_space<vmem>>, vector<1x2x8x128xf32>
      tpu.vector_store %arg4[%c0_23, %c0_24, %c0_25, %c0_26], %29 {strides = array<i32>} : memref<1x2x8x128xf32, #tpu.memory_space<vmem>>, vector<1x2x8x128xf32>,
    } else {
    }
    %c0 = arith.constant 0 : index
    %c0_1 = arith.constant 0 : index
    %3 = vector.load %arg2[%c0, %c0_1] : memref<8x128xf32, #tpu.memory_space<vmem>>, vector<8x128xf32>
    %c0_2 = arith.constant 0 : index
    %c0_3 = arith.constant 0 : index
    %4 = vector.load %arg3[%c0_2, %c0_3] : memref<8x128xf32, #tpu.memory_space<vmem>>, vector<8x128xf32>
    %cst = arith.constant -1.000000e+02 : f32
    %5 = vector.broadcast %cst : f32 to vector<8x128xf32>
    %6 = arith.cmpf one, %4, %5 : vector<8x128xf32>
    %7 = arith.subf %3, %4 : vector<8x128xf32>
    %8 = math.absf %7 : vector<8x128xf32>
    %cst_4 = arith.constant 0.000000e+00 : f32
    %9 = vector.broadcast %cst_4 : f32 to vector<8x128xf32>
    %10 = arith.select %6, %8, %9 : vector<8x128xi1>, vector<8x128xf32>
    %11 = arith.extui %6 : vector<8x128xi1> to vector<8x128xi32>
    %12 = arith.sitofp %11 : vector<8x128xi32> to vector<8x128xf32>
    %13 = vector.shape_cast %10 : vector<8x128xf32> to vector<1x8x128xf32>
    %cst_5 = arith.constant dense<0.000000e+00> : vector<8x128xf32>
    %14 = vector.multi_reduction <add>, %13, %cst_5 [0] : vector<1x8x128xf32> to vector<8x128xf32>
    %15 = vector.shape_cast %12 : vector<8x128xf32> to vector<1x8x128xf32>
    %cst_6 = arith.constant dense<0.000000e+00> : vector<8x128xf32>
    %16 = vector.multi_reduction <add>, %15, %cst_6 [0] : vector<1x8x128xf32> to vector<8x128xf32>
    %c0_7 = arith.constant 0 : index
    %c0_8 = arith.constant 0 : index
    %c0_9 = arith.constant 0 : index
    %c0_10 = arith.constant 0 : index
    %17 = vector.load %arg4[%c0_7, %c0_8, %c0_9, %c0_10] : memref<1x2x8x128xf32, #tpu.memory_space<vmem>>, vector<1x1x8x128xf32>
    %18 = vector.shape_cast %17 : vector<1x1x8x128xf32> to vector<8x128xf32>
    %19 = arith.addf %18, %14 : vector<8x128xf32>
    %c0_11 = arith.constant 0 : index
    %c0_12 = arith.constant 0 : index
    %c0_13 = arith.constant 0 : index
    %c0_14 = arith.constant 0 : index
    %20 = vector.load %arg4[%c0_11, %c0_12, %c0_13, %c0_14] : memref<1x2x8x128xf32, #tpu.memory_space<vmem>>, vector<1x1x8x128xf32>
    %21 = vector.shape_cast %20 : vector<1x1x8x128xf32> to vector<8x128xf32>
    %22 = vector.shape_cast %19 : vector<8x128xf32> to vector<1x1x8x128xf32>
    tpu.vector_store %arg4[%c0_11, %c0_12, %c0_13, %c0_14], %22 {strides = array<i32>} : memref<1x2x8x128xf32, #tpu.memory_space<vmem>>, vector<1x1x8x128xf32>,
    %c0_15 = arith.constant 0 : index
    %c1 = arith.constant 1 : index
    %c0_16 = arith.constant 0 : index
    %c0_17 = arith.constant 0 : index
    %23 = vector.load %arg4[%c0_15, %c1, %c0_16, %c0_17] : memref<1x2x8x128xf32, #tpu.memory_space<vmem>>, vector<1x1x8x128xf32>
    %24 = vector.shape_cast %23 : vector<1x1x8x128xf32> to vector<8x128xf32>
    %25 = arith.addf %24, %16 : vector<8x128xf32>
    %c0_18 = arith.constant 0 : index
    %c1_19 = arith.constant 1 : index
    %c0_20 = arith.constant 0 : index
    %c0_21 = arith.constant 0 : index
    %26 = vector.load %arg4[%c0_18, %c1_19, %c0_20, %c0_21] : memref<1x2x8x128xf32, #tpu.memory_space<vmem>>, vector<1x1x8x128xf32>
    %27 = vector.shape_cast %26 : vector<1x1x8x128xf32> to vector<8x128xf32>
    %28 = vector.shape_cast %25 : vector<8x128xf32> to vector<1x1x8x128xf32>
    tpu.vector_store %arg4[%c0_18, %c1_19, %c0_20, %c0_21], %28 {strides = array<i32>} : memref<1x2x8x128xf32, #tpu.memory_space<vmem>>, vector<1x1x8x128xf32>,
    return
  }
  func.func @transform_0(%arg0: i32, %arg1: i32) -> (i32, i32) {
    %c1_i32 = arith.constant 1 : i32
    %0 = arith.muli %arg0, %c1_i32 : i32
    %1 = arith.addi %0, %arg1 : i32
    %c0_i32 = arith.constant 0 : i32
    %c0_i32_0 = arith.constant 0 : i32
    return %1, %c0_i32 : i32, i32
  }
  func.func @transform_1(%arg0: i32, %arg1: i32) -> (i32, i32) {
    %c1_i32 = arith.constant 1 : i32
    %0 = arith.muli %arg0, %c1_i32 : i32
    %1 = arith.addi %0, %arg1 : i32
    %c0_i32 = arith.constant 0 : i32
    %c0_i32_0 = arith.constant 0 : i32
    return %1, %c0_i32 : i32, i32
  }
  func.func @transform_2(%arg0: i32, %arg1: i32) -> (i32, i32, i32, i32) {
    %c0_i32 = arith.constant 0 : i32
    %c0_i32_0 = arith.constant 0 : i32
    %c0_i32_1 = arith.constant 0 : i32
    %c0_i32_2 = arith.constant 0 : i32
    return %arg0, %c0_i32, %c0_i32_0, %c0_i32_1 : i32, i32, i32, i32
  }
}

</mosaic_0001>

<bundles_post_ra>
// kernel: tpu_custom_call.1
= control target key start
LH: loop header
LB: loop body
LE: loop exit
PB: predicated region body
PF: predicated region fallthrough
CT: control target
= control target key end

     0   :  { %7 = vsyncpa [#allocation3], 0  ;;  %s221_s0 = inlined_call_operand.hbm [shape: f32[8,128], index: 0, kind: input, shape index: {}]   ;;  %s222_s1 = inlined_call_operand.hbm [shape: f32[8,128], index: 1, kind: input, shape index: {}]   ;;  %s223_s2 = inlined_call_operand.hbm [shape: f32[1,2,8,128], index: 2, kind: output, shape index: {}]  }
   0x1   :  { %8 = vsyncpa [#allocation6], 0 }
   0x2   :  { %9 = vsyncpa [#allocation4], 0  ;;  %s164_s9 = smov [#allocation2]   ;;  %s165_s11 = smov [#allocation5]  }
   0x3   :  { %s19_s10 = sshll.u32 %s164_s9, 4  ;;  %s32_s12 = sshll.u32 %s165_s11, 4  ;;  %s20_s10 = int_to_ptr.vmem [resolvable:$true] %s19_s10  ;;  %s33_s12 = int_to_ptr.vmem [resolvable:$true] %s32_s12 }
   0x4   :  { %s92_s15 = scalar_lea.hbm %s221_s0, 128 }
   0x5   :  { %p93_p0 = scmp.ne.s32.totalorder %s221_s0, %s92_s15  ;;  %p96_p1 = scmp.lt.u32.totalorder %s92_s15, %s221_s0 }
   0x7   :  { %p98_p2 = pnand %p96_p1, %p93_p0 }
   0x9   :  { %101 = shalt.err (!%p98_p2)
}
   0xa   :  { %s102_s20 = scalar_lea.vmem %s20_s10, 128  ;;  %p107_p4 = scmp.lt.s32.totalorder %s20_s10, %s20_s10 }
   0xb   :  { %p103_p3 = scmp.ne.s32.totalorder %s20_s10, %s102_s20  ;;  %p108_p5 = scmp.lt.s32.totalorder %s102_s20, %s102_s20 }
   0xd   :  { %p109_p6 = por %p108_p5, %p107_p4 }
   0xf   :  { %p110_p7 = pnand %p109_p6, %p103_p3 }
  0x11   :  { %113 = shalt.err (!%p110_p7)
}
  0x12   :  { %22 = dma.hbm_to_vmem [thread:$0]  %s221_s0, 128, %s20_s10, [#allocation3]  }
  0x13   :  { %s114_s25 = scalar_lea.hbm %s222_s1, 128 }
  0x14   :  { %p115_p8 = scmp.ne.s32.totalorder %s222_s1, %s114_s25  ;;  %p118_p9 = scmp.lt.u32.totalorder %s114_s25, %s222_s1 }
  0x16   :  { %p120_p10 = pnand %p118_p9, %p115_p8 }
  0x18   :  { %123 = shalt.err (!%p120_p10)
}
  0x19   :  { %s124_s30 = scalar_lea.vmem %s33_s12, 128  ;;  %p129_p12 = scmp.lt.s32.totalorder %s33_s12, %s33_s12 }
  0x1a   :  { %p125_p11 = scmp.ne.s32.totalorder %s33_s12, %s124_s30  ;;  %p130_p13 = scmp.lt.s32.totalorder %s124_s30, %s124_s30 }
  0x1c   :  { %p131_p0 = por %p130_p13, %p129_p12 }
  0x1e   :  { %p132_p1 = pnand %p131_p0, %p125_p11 }
  0x20   :  { %135 = shalt.err (!%p132_p1)
}
  0x21   :  { %35 = dma.hbm_to_vmem [thread:$0]  %s222_s1, 128, %s33_s12, [#allocation6]  }
  0x22   :  { %158 = dma.done.wait [#allocation3], 128  }
  0x23   :  { %159 = vsyncadd [#allocation3], 4294967168 }
  0x24   :  { %160 = dma.done.wait [#allocation6], 128  }
  0x25   :  { %161 = vsyncadd [#allocation6], 4294967168  ;;  %v50_v0 = vld [vmem:[#allocation2] sm:$0xff]  ;;  %v51_v1 = vld [vmem:[#allocation5] sm:$0xff]  ;;  %v166_v3 = vmov 0.0   ;;  %s167_s4 = smov [#allocation7]  }
  0x26   :  { %vm52_vm0 = vcmp.ne.f32.partialorder %v51_v1, -100.0  ;;  %v53_v2 = vsub.f32 %v50_v0, %v51_v1  ;;  %s72_s5 = sshll.u32 %s167_s4, 4  ;;  %s73_s5 = int_to_ptr.vmem [resolvable:$true] %s72_s5 }
  0x27   :  { %v85_v4 = vsel %vm52_vm0, 1.0, %v166_v3  ;;  %s136_s6 = scalar_lea.vmem %s73_s5, 256  ;;  %p141_p3 = scmp.lt.s32.totalorder %s73_s5, %s73_s5 }
  0x28   :  { %v54_v5 = vand.u32 2147483647, %v53_v2  ;;  %66 = vst [vmem:[#allocation7 + $0x8] sm:$0xff] %v85_v4  ;;  %p137_p2 = scmp.ne.s32.totalorder %s73_s5, %s136_s6  ;;  %p142_p4 = scmp.lt.s32.totalorder %s136_s6, %s136_s6 }
  0x2a   :  { %v55_v6 = vsel %vm52_vm0, %v54_v5, 0.0  ;;  %p143_p5 = por %p142_p4, %p141_p3 }
  0x2b   :  { %62 = vst [vmem:[#allocation7] sm:$0xff] %v55_v6 }
  0x2c   :  { %p144_p6 = pnand %p143_p5, %p137_p2 }
  0x2e   :  { %147 = shalt.err (!%p144_p6)
}
  0x2f   :  { %s148_s8 = scalar_lea.hbm %s223_s2, 256 }
  0x30   :  { %p149_p7 = scmp.ne.s32.totalorder %s223_s2, %s148_s8  ;;  %p152_p8 = scmp.lt.u32.totalorder %s148_s8, %s223_s2 }
  0x32   :  { %p154_p9 = pnand %p152_p8, %p149_p7 }
  0x34   :  { %157 = shalt.err (!%p154_p9)
}
  0x35   :  { %s168_s13 = smov 128   ;;  %s169_s14 = smov 8  }
  0x36   :  { %78 = dma.vmem_to_hbm [thread:$0]  %s73_s5, 256, %s223_s2, [#allocation4], %s168_s13, %s168_s13, %s169_s14  }
  0x37   :  { %162 = dma.done.wait [#allocation4], 256  }
  0x38   :  { %163 = vsyncadd [#allocation4], 4294967040 }
  0x39   :  { %82 = vsyncpa [#allocation3], 1 }
  0x3a   :  { %83 = vsyncpa [#allocation6], 1 }
  0x3b   :  { %84 = vsyncpa [#allocation4], 1 }

</bundles_post_ra>
